<compile_context>
chip_gen: v5e
topology: v5e:2x2
jax: 0.10.0
libtpu: 0.0.40
codegen_flags: <defaults>
</compile_context>

<pallas_src>
import functools
import math

import jax
import jax.numpy as jnp
from jax.experimental import pallas as pl
from jax.experimental.pallas import tpu as pltpu

# Tempotron constants (defaults from SpikingFlow event_driven.neuron.Tempotron)
TAU = 15.0
TAU_S = 15.0 / 4
V_THRESHOLD = 1.0
T_MAX = (TAU * TAU_S * math.log(TAU / TAU_S)) / (TAU - TAU_S)
V0 = V_THRESHOLD / (math.exp(-T_MAX / TAU) - math.exp(-T_MAX / TAU_S))

_EXP_CLAMP = 80.0  # keep exp() arguments finite in f32 for pathological spike times


def _tempotron_kernel(x_ref, w_ref, o_ref, e1_ref, e2_ref, *,
                      T, t_tile, compute_dtype, needs_t_mask):
    """One grid step == one (batch tile, timestep tile)."""
    ti = pl.program_id(1)
    bt, np_ = x_ref.shape
    op = o_ref.shape[1]

    # --- once per batch tile: hoist time-invariant transcendentals + init out ---
    @pl.when(ti == 0)
    def _():
        s0 = x_ref[...]
        has_spike = s0 >= 0.0
        e1_ref[...] = jnp.where(
            has_spike, V0 * jnp.exp(jnp.minimum(s0 * (1.0 / TAU), _EXP_CLAMP)), 0.0)
        e2_ref[...] = jnp.where(
            has_spike, V0 * jnp.exp(jnp.minimum(s0 * (1.0 / TAU_S), _EXP_CLAMP)), 0.0)
        o_ref[...] = jnp.full(o_ref.shape, -jnp.inf, o_ref.dtype)

    s = x_ref[...]                                              # [bt, np_] spike times

    # Timesteps covered by this grid step: t = ti*t_tile + k, k in [0, t_tile)
    t0 = (ti * t_tile).astype(jnp.float32)
    k = jax.lax.broadcasted_iota(jnp.int32, (t_tile, bt), 0).astype(jnp.float32)
    tt = t0 + k                                                 # [t_tile, bt]
    a_t = jnp.exp(tt * (-1.0 / TAU))[:, :, None]                # [t_tile, bt, 1]
    b_t = jnp.exp(tt * (-1.0 / TAU_S))[:, :, None]              # [t_tile, bt, 1]

    # PSP slab for all timesteps in the tile: cheap VPU ops only (no per-step exps).
    v_in = jnp.where(
        tt[:, :, None] >= s[None, :, :],
        a_t * e1_ref[...][None, :, :] - b_t * e2_ref[...][None, :, :],
        0.0)                                                    # [t_tile, bt, np_]

    # Fold the timestep axis into the matmul M dimension -> one MXU dot per tile.
    slab = v_in.reshape(t_tile * bt, np_).astype(compute_dtype)
    v = jnp.dot(slab, w_ref[...], preferred_element_type=jnp.float32)
    v3 = v.reshape(t_tile, bt, op)                              # [t_tile, bt, op]

    if needs_t_mask:  # static: only when T was padded up to a multiple of t_tile
        v3 = jnp.where(tt[:, :, None] < float(T), v3, -jnp.inf)

    # Running max over time, accumulated directly in the resident output block.
    o_ref[...] = jnp.maximum(o_ref[...], v3.max(axis=0))


def tempotron_vmax(x, weight, T, *, compute_dtype=jnp.bfloat16):
    """x: [B, N] spike times (f32).  weight: [out, N] (PyTorch Linear layout)."""
    B, N = x.shape
    out_features = weight.shape[0]

    # ----- padding / tile selection -----
    Np = ((N + 127) // 128) * 128                       # lane axis (features)
    Op = max(128, ((out_features + 127) // 128) * 128)  # lane axis (outputs)

    Bp = max(8, ((B + 7) // 8) * 8)                     # sublane padding
    if Bp <= 128:
        Bt = Bp
    else:
        Bt = 128
        Bp = ((Bp + Bt - 1) // Bt) * Bt
    nb = Bp // Bt

    # Fold timesteps so each dot has ~256 M rows (MXU fill), bounded by VMEM slab size.
    rows_target = 256
    slab_budget_bytes = 4 << 20
    t_tile = max(1, rows_target // Bt)
    slab_cap = max(1, slab_budget_bytes // (Bt * Np * 4))
    t_tile = max(1, min(t_tile, slab_cap, T))
    nt = (T + t_tile - 1) // t_tile
    Tp = nt * t_tile

    # Padded rows/cols get spike time -1 ("no spike") -> contribute exactly 0.
    x_p = jnp.full((Bp, Np), -1.0, jnp.float32).at[:B, :N].set(x.astype(jnp.float32))
    # Weight transposed to [N, out], zero-padded, cast to the MXU operand dtype.
    w_p = jnp.zeros((Np, Op), compute_dtype).at[:N, :out_features].set(
        weight.T.astype(compute_dtype))

    kernel = functools.partial(
        _tempotron_kernel,
        T=T, t_tile=t_tile, compute_dtype=compute_dtype, needs_t_mask=(Tp != T))

    out_p = pl.pallas_call(
        kernel,
        out_shape=jax.ShapeDtypeStruct((Bp, Op), jnp.float32),
        grid_spec=pltpu.PrefetchScalarGridSpec(
            num_scalar_prefetch=0,
            grid=(nb, nt),
            in_specs=[
                pl.BlockSpec((Bt, Np), lambda bi, ti: (bi, 0)),   # spike times
                pl.BlockSpec((Np, Op), lambda bi, ti: (0, 0)),    # weights (resident)
            ],
            out_specs=pl.BlockSpec((Bt, Op), lambda bi, ti: (bi, 0)),
            scratch_shapes=[
                pltpu.VMEM((Bt, Np), jnp.float32),   # E1 = V0*exp(s/tau)   * (s>=0)
                pltpu.VMEM((Bt, Np), jnp.float32),   # E2 = V0*exp(s/tau_s) * (s>=0)
            ],
        ),
        compiler_params=pltpu.CompilerParams(
            dimension_semantics=("parallel", "arbitrary")),
    )(x_p, w_p)

    return out_p[:B, :out_features]


def tempotron_vmax_ref(x, weight, T):
    """Pure-JAX reference mirroring the PyTorch Tempotron forward (NaN-safe)."""
    t = jnp.arange(T, dtype=jnp.float32)[None, None, :]          # [1, 1, T]
    s = x.astype(jnp.float32)[:, :, None]                        # [B, N, 1]
    dt = t - s
    mask = (dt >= 0) & (s >= 0)
    psp = jnp.where(mask, jnp.exp(-dt / TAU) - jnp.exp(-dt / TAU_S), 0.0)
    v_in = V0 * psp                                              # [B, N, T]
    v = jnp.einsum('bnt,on->bto', v_in, weight.astype(jnp.float32))  # [B, T, out]
    return v.max(axis=1)                                         # [B, out]


if __name__ == "__main__":
    def run_case(batch, in_features, T, key):
        kx, kw = jax.random.split(key)
        # Spike times in [-2, T): negative values mean "no spike".
        x = jax.random.uniform(kx, (batch, in_features), jnp.float32,
                               minval=-2.0, maxval=float(T))
        bound = 1.0 / math.sqrt(in_features)
        weight = jax.random.uniform(kw, (10, in_features), jnp.float32,
                                    minval=-bound, maxval=bound)

        ref = tempotron_vmax_ref(x, weight, T)

        out_f32 = jax.block_until_ready(
            tempotron_vmax(x, weight, T, compute_dtype=jnp.float32))
        assert out_f32.shape == (batch, 10)
        assert jnp.allclose(out_f32, ref, rtol=1e-4, atol=1e-4), "f32 mismatch vs ref"

        out_bf16 = jax.block_until_ready(
            tempotron_vmax(x, weight, T, compute_dtype=jnp.bfloat16))
        assert out_bf16.shape == (batch, 10)
        assert jnp.allclose(out_bf16, ref, rtol=5e-2, atol=5e-2), "bf16 mismatch vs ref"

    key = jax.random.PRNGKey(0)
    k1, k2 = jax.random.split(key)

    # Net(m=1, T=8): in_features = 784, 10 classes, batch = 2 (single folded grid step).
    run_case(batch=2, in_features=784, T=8, key=k1)
    # Multi t-tile path: T padded to a multiple of t_tile, non-multiple-of-128 features.
    run_case(batch=3, in_features=200, T=40, key=k2)

    print("KERNEL_OK")
</pallas_src>

<mosaic_0001>
module attributes {stable_mosaic.version = 11 : i64} {
  func.func @_tempotron_kernel(%arg0: i32, %arg1: i32, %arg2: memref<8x896xf32, #tpu.memory_space<vmem>>, %arg3: memref<896x128xf32, #tpu.memory_space<vmem>>, %arg4: memref<8x128xf32, #tpu.memory_space<vmem>>, %arg5: memref<8x896xf32, #tpu.memory_space<vmem>>, %arg6: memref<8x896xf32, #tpu.memory_space<vmem>>) attributes {dimension_semantics = [#tpu.dimension_semantics<parallel>, #tpu.dimension_semantics<arbitrary>], iteration_bounds = array<i64: 1, 1>, scalar_prefetch = 0 : i64, scratch_operands = 2 : i64, tpu.core_type = #tpu.core_type<tc>, window_params = [{transform_indices = @transform_0, window_bounds = array<i64: 8, 896>}, {pipeline_mode = #tpu.pipeline_mode<synchronous>, transform_indices = @transform_1, window_bounds = array<i64: 896, 128>}, {transform_indices = @transform_2, window_bounds = array<i64: 8, 128>}]} {
    %c0_i32 = arith.constant 0 : i32
    %0 = arith.cmpi eq, %arg1, %c0_i32 : i32
    %1 = arith.extui %0 : i1 to i32
    %c0_i32_0 = arith.constant 0 : i32
    %2 = arith.cmpi ne, %1, %c0_i32_0 : i32
    scf.if %2 {
      %c0_16 = arith.constant 0 : index
      %c0_17 = arith.constant 0 : index
      %44 = vector.load %arg2[%c0_16, %c0_17] : memref<8x896xf32, #tpu.memory_space<vmem>>, vector<8x896xf32>
      %cst_18 = arith.constant 0.000000e+00 : f32
      %45 = vector.broadcast %cst_18 : f32 to vector<8x896xf32>
      %46 = arith.cmpf oge, %44, %45 : vector<8x896xf32>
      %cst_19 = arith.constant 0.0666666701 : f32
      %47 = vector.broadcast %cst_19 : f32 to vector<8x896xf32>
      %48 = arith.mulf %44, %47 : vector<8x896xf32>
      %cst_20 = arith.constant 8.000000e+01 : f32
      %49 = vector.broadcast %cst_20 : f32 to vector<8x896xf32>
      %50 = arith.minimumf %48, %49 : vector<8x896xf32>
      %51 = math.exp %50 : vector<8x896xf32>
      %cst_21 = arith.constant 2.11653471 : f32
      %52 = vector.broadcast %cst_21 : f32 to vector<8x896xf32>
      %53 = arith.mulf %52, %51 : vector<8x896xf32>
      %cst_22 = arith.constant 0.000000e+00 : f32
      %54 = vector.broadcast %cst_22 : f32 to vector<8x896xf32>
      %55 = arith.select %46, %53, %54 : vector<8x896xi1>, vector<8x896xf32>
      %c0_23 = arith.constant 0 : index
      %c0_24 = arith.constant 0 : index
      %56 = vector.load %arg5[%c0_23, %c0_24] : memref<8x896xf32, #tpu.memory_space<vmem>>, vector<8x896xf32>
      tpu.vector_store %arg5[%c0_23, %c0_24], %55 {strides = array<i32>} : memref<8x896xf32, #tpu.memory_space<vmem>>, vector<8x896xf32>,
      %cst_25 = arith.constant 0.266666681 : f32
      %57 = vector.broadcast %cst_25 : f32 to vector<8x896xf32>
      %58 = arith.mulf %44, %57 : vector<8x896xf32>
      %cst_26 = arith.constant 8.000000e+01 : f32
      %59 = vector.broadcast %cst_26 : f32 to vector<8x896xf32>
      %60 = arith.minimumf %58, %59 : vector<8x896xf32>
      %61 = math.exp %60 : vector<8x896xf32>
      %cst_27 = arith.constant 2.11653471 : f32
      %62 = vector.broadcast %cst_27 : f32 to vector<8x896xf32>
      %63 = arith.mulf %62, %61 : vector<8x896xf32>
      %cst_28 = arith.constant 0.000000e+00 : f32
      %64 = vector.broadcast %cst_28 : f32 to vector<8x896xf32>
      %65 = arith.select %46, %63, %64 : vector<8x896xi1>, vector<8x896xf32>
      %c0_29 = arith.constant 0 : index
      %c0_30 = arith.constant 0 : index
      %66 = vector.load %arg6[%c0_29, %c0_30] : memref<8x896xf32, #tpu.memory_space<vmem>>, vector<8x896xf32>
      tpu.vector_store %arg6[%c0_29, %c0_30], %65 {strides = array<i32>} : memref<8x896xf32, #tpu.memory_space<vmem>>, vector<8x896xf32>,
      %cst_31 = arith.constant 0xFF800000 : f32
      %67 = vector.broadcast %cst_31 : f32 to vector<8x128xf32>
      %c0_32 = arith.constant 0 : index
      %c0_33 = arith.constant 0 : index
      %68 = vector.load %arg4[%c0_32, %c0_33] : memref<8x128xf32, #tpu.memory_space<vmem>>, vector<8x128xf32>
      tpu.vector_store %arg4[%c0_32, %c0_33], %67 {strides = array<i32>} : memref<8x128xf32, #tpu.memory_space<vmem>>, vector<8x128xf32>,
    } else {
    }
    %c0 = arith.constant 0 : index
    %c0_1 = arith.constant 0 : index
    %3 = vector.load %arg2[%c0, %c0_1] : memref<8x896xf32, #tpu.memory_space<vmem>>, vector<8x896xf32>
    %c8_i32 = arith.constant 8 : i32
    %4 = arith.muli %arg1, %c8_i32 : i32
    %5 = arith.sitofp %4 : i32 to f32
    %6 = tpu.iota {dimensions = array<i32: 0>} : vector<8x8xi32>
    %7 = arith.sitofp %6 : vector<8x8xi32> to vector<8x8xf32>
    %8 = vector.broadcast %5 : f32 to vector<8x8xf32>
    %9 = arith.addf %8, %7 : vector<8x8xf32>
    %cst = arith.constant -0.0666666701 : f32
    %10 = vector.broadcast %cst : f32 to vector<8x8xf32>
    %11 = arith.mulf %9, %10 : vector<8x8xf32>
    %12 = math.exp %11 : vector<8x8xf32>
    %13 = vector.shape_cast %12 : vector<8x8xf32> to vector<8x8x1xf32>
    %cst_2 = arith.constant -0.266666681 : f32
    %14 = vector.broadcast %cst_2 : f32 to vector<8x8xf32>
    %15 = arith.mulf %9, %14 : vector<8x8xf32>
    %16 = math.exp %15 : vector<8x8xf32>
    %17 = vector.shape_cast %16 : vector<8x8xf32> to vector<8x8x1xf32>
    %18 = vector.shape_cast %9 : vector<8x8xf32> to vector<8x8x1xf32>
    %19 = vector.shape_cast %3 : vector<8x896xf32> to vector<1x8x896xf32>
    %20 = vector.broadcast %18 : vector<8x8x1xf32> to vector<8x8x896xf32>
    %21 = vector.broadcast %19 : vector<1x8x896xf32> to vector<8x8x896xf32>
    %22 = arith.cmpf oge, %20, %21 : vector<8x8x896xf32>
    %c0_3 = arith.constant 0 : index
    %c0_4 = arith.constant 0 : index
    %23 = vector.load %arg5[%c0_3, %c0_4] : memref<8x896xf32, #tpu.memory_space<vmem>>, vector<8x896xf32>
    %24 = vector.shape_cast %23 : vector<8x896xf32> to vector<1x8x896xf32>
    %25 = vector.broadcast %13 : vector<8x8x1xf32> to vector<8x8x896xf32>
    %26 = vector.broadcast %24 : vector<1x8x896xf32> to vector<8x8x896xf32>
    %27 = arith.mulf %25, %26 : vector<8x8x896xf32>
    %c0_5 = arith.constant 0 : index
    %c0_6 = arith.constant 0 : index
    %28 = vector.load %arg6[%c0_5, %c0_6] : memref<8x896xf32, #tpu.memory_space<vmem>>, vector<8x896xf32>
    %29 = vector.shape_cast %28 : vector<8x896xf32> to vector<1x8x896xf32>
    %30 = vector.broadcast %17 : vector<8x8x1xf32> to vector<8x8x896xf32>
    %31 = vector.broadcast %29 : vector<1x8x896xf32> to vector<8x8x896xf32>
    %32 = arith.mulf %30, %31 : vector<8x8x896xf32>
    %33 = arith.subf %27, %32 : vector<8x8x896xf32>
    %cst_7 = arith.constant 0.000000e+00 : f32
    %34 = vector.broadcast %cst_7 : f32 to vector<8x8x896xf32>
    %35 = arith.select %22, %33, %34 : vector<8x8x896xi1>, vector<8x8x896xf32>
    %36 = vector.shape_cast %35 : vector<8x8x896xf32> to vector<64x896xf32>
    %c0_8 = arith.constant 0 : index
    %c0_9 = arith.constant 0 : index
    %37 = vector.load %arg3[%c0_8, %c0_9] : memref<896x128xf32, #tpu.memory_space<vmem>>, vector<896x128xf32>
    %cst_10 = arith.constant dense<0.000000e+00> : vector<64x128xf32>
    %38 = tpu.matmul %36, %37, %cst_10 {dimension_numbers = #tpu.dot_dimension_numbers<[1], [0], [0], [1], [0, 0, 1, 1], [], []>} : vector<64x896xf32>, vector<896x128xf32>, vector<64x128xf32> -> vector<64x128xf32>
    %39 = vector.shape_cast %38 : vector<64x128xf32> to vector<8x8x128xf32>
    %c0_11 = arith.constant 0 : index
    %c0_12 = arith.constant 0 : index
    %40 = vector.load %arg4[%c0_11, %c0_12] : memref<8x128xf32, #tpu.memory_space<vmem>>, vector<8x128xf32>
    %cst_13 = arith.constant dense<0xFF800000> : vector<8x128xf32>
    %41 = vector.multi_reduction <maximumf>, %39, %cst_13 [0] : vector<8x8x128xf32> to vector<8x128xf32>
    %42 = arith.maximumf %40, %41 : vector<8x128xf32>
    %c0_14 = arith.constant 0 : index
    %c0_15 = arith.constant 0 : index
    %43 = vector.load %arg4[%c0_14, %c0_15] : memref<8x128xf32, #tpu.memory_space<vmem>>, vector<8x128xf32>
    tpu.vector_store %arg4[%c0_14, %c0_15], %42 {strides = array<i32>} : memref<8x128xf32, #tpu.memory_space<vmem>>, vector<8x128xf32>,
    return
  }
  func.func @transform_0(%arg0: i32, %arg1: i32) -> (i32, i32) {
    %c0_i32 = arith.constant 0 : i32
    %c0_i32_0 = arith.constant 0 : i32
    return %arg0, %c0_i32 : i32, i32
  }
  func.func @transform_1(%arg0: i32, %arg1: i32) -> (i32, i32) {
    %c0_i32 = arith.constant 0 : i32
    %c0_i32_0 = arith.constant 0 : i32
    %c0_i32_1 = arith.constant 0 : i32
    return %c0_i32, %c0_i32_0 : i32, i32
  }
  func.func @transform_2(%arg0: i32, %arg1: i32) -> (i32, i32) {
    %c0_i32 = arith.constant 0 : i32
    %c0_i32_0 = arith.constant 0 : i32
    return %arg0, %c0_i32 : i32, i32
  }
}

</mosaic_0001>

<bundles_post_ra>
// kernel: tpu_custom_call.1
= control target key start
LH: loop header
LB: loop body
LE: loop exit
PB: predicated region body
PF: predicated region fallthrough
CT: control target
= control target key end

     0   :  { %7 = vsyncpa [#allocation5], 0  ;;  %s1964_s0 = inlined_call_operand.hbm [shape: f32[8,896], index: 0, kind: input, shape index: {}]   ;;  %s1965_s1 = inlined_call_operand.hbm [shape: f32[896,128], index: 1, kind: input, shape index: {}]   ;;  %s1966_s2 = inlined_call_operand.hbm [shape: f32[8,128], index: 2, kind: output, shape index: {}]  }
   0x1   :  { %8 = vsyncpa [#allocation8], 0 }
   0x2   :  { %9 = vsyncpa [#allocation6], 0  ;;  %s15_s11 = sshll.u32 %s1964_s0, 4  ;;  %s1144_s12 = smov [#allocation4]   ;;  %s16_s11 = int_to_ptr.hbm [resolvable:$true] %s15_s11 }
   0x3   :  { %s17_s13 = sshll.u32 %s1144_s12, 4  ;;  %s25_s16 = sshll.u32 %s1965_s1, 4  ;;  %s18_s13 = int_to_ptr.vmem [resolvable:$true] %s17_s13  ;;  %s26_s16 = int_to_ptr.hbm [resolvable:$true] %s25_s16 }
   0x4   :  { %20 = dma.hbm_to_vmem [thread:$0]  %s16_s11, 896, %s18_s13, [#allocation5]  }
   0x5   :  { %s1145_s17 = smov [#allocation7]   ;;  %s1146_s19 = smov 128  }
   0x6   :  { %s27_s18 = sshll.u32 %s1145_s17, 4  ;;  %s1147_s20 = smov 8   ;;  %s28_s18 = int_to_ptr.vmem [resolvable:$true] %s27_s18 }
   0x7   :  { %33 = dma.hbm_to_vmem [thread:$0]  %s26_s16, 14336, %s28_s18, [#allocation8], %s1146_s19, %s1146_s19, %s1147_s20  }
   0x8   :  { %1138 = dma.done.wait [#allocation5], 896  }
   0x9   :  { %1139 = vsyncadd [#allocation5], 4294966400 }
   0xa   :  { %1140 = dma.done.wait [#allocation8], 14336  }
   0xb   :  { %1141 = vsyncadd [#allocation8], 4294952960  ;;  %v168_v0 = vlaneseq  ;;  %v512_v1 = vld [vmem:[#allocation7 + $0x78] sm:$0xff]  ;;  %v511_v4 = vld [vmem:[#allocation7 + $0x70] sm:$0xff]  ;;  %s1148_s0 = smov [#allocation9]   ;;  %s913_s23 = sshll.u32 %s1966_s2, 4  ;;  %s914_s23 = int_to_ptr.hbm [resolvable:$true] %s913_s23 }
   0xc   :  { %v528_v2 = vld [vmem:[#allocation7 + $0xf8] sm:$0xff]  ;;  %609 = vmatpush.msra.mxu0 %v512_v1  ;;  %980 = vmatpush.msra.mxu3 %v512_v1  ;;  %v527_v5 = vld [vmem:[#allocation7 + $0xf0] sm:$0xff]  ;;  %v510_v7 = vld [vmem:[#allocation7 + $0x68] sm:$0xff]  ;;  %s911_s1 = sshll.u32 %s1148_s0, 4  ;;  %s912_s1 = int_to_ptr.vmem [resolvable:$true] %s911_s1 }
   0xd   :  { %v544_v3 = vld [vmem:[#allocation7 + $0x178] sm:$0xff]  ;;  %v543_v6 = vld [vmem:[#allocation7 + $0x170] sm:$0xff]  ;;  %650 = vmatpush.msra.mxu1 %v528_v2  ;;  %v169_v8 = vshrl.u32 %v168_v0, 7  ;;  %v526_v9 = vld [vmem:[#allocation7 + $0xe8] sm:$0xff] }
   0xe   :  { %691 = vmatpush.msra.mxu2 %v544_v3  ;;  %610 = vmatpush.msra.mxu0 %v511_v4  ;;  %v542_v10 = vld [vmem:[#allocation7 + $0x168] sm:$0xff]  ;;  %v509_v11 = vld [vmem:[#allocation7 + $0x60] sm:$0xff]  ;;  %v508_v14 = vld [vmem:[#allocation7 + $0x58] sm:$0xff] }
   0xf   :  { %981 = vmatpush.msra.mxu3 %v511_v4  ;;  %651 = vmatpush.msra.mxu1 %v527_v5  ;;  %v525_v12 = vld [vmem:[#allocation7 + $0xe0] sm:$0xff]  ;;  %v1170_v15 = vcvt.s32.f32 %v169_v8  ;;  %v524_v16 = vld [vmem:[#allocation7 + $0xd8] sm:$0xff]  ;;  %v507_v18 = vld [vmem:[#allocation7 + $0x50] sm:$0xff] }
  0x10   :  { %692 = vmatpush.msra.mxu2 %v543_v6  ;;  %611 = vmatpush.msra.mxu0 %v510_v7  ;;  %v541_v13 = vld [vmem:[#allocation7 + $0x160] sm:$0xff]  ;;  %v540_v17 = vld [vmem:[#allocation7 + $0x158] sm:$0xff]  ;;  %v523_v19 = vld [vmem:[#allocation7 + $0xd0] sm:$0xff] }
  0x11   :  { %982 = vmatpush.msra.mxu3 %v510_v7  ;;  %652 = vmatpush.msra.mxu1 %v526_v9  ;;  %v539_v20 = vld [vmem:[#allocation7 + $0x150] sm:$0xff]  ;;  %v506_v21 = vld [vmem:[#allocation7 + $0x48] sm:$0xff]  ;;  %v173_v22 = vmul.f32 -0.06666667, %v1170_v15  ;;  %v184_v25 = vmul.f32 -0.26666668, %v1170_v15 }
  0x12   :  { %693 = vmatpush.msra.mxu2 %v542_v10  ;;  %612 = vmatpush.msra.mxu0 %v509_v11  ;;  %v522_v23 = vld [vmem:[#allocation7 + $0xc8] sm:$0xff]  ;;  %v505_v26 = vld [vmem:[#allocation7 + $0x40] sm:$0xff]  ;;  %v504_v29 = vld [vmem:[#allocation7 + $0x38] sm:$0xff] }
  0x13   :  { %983 = vmatpush.msra.mxu3 %v509_v11  ;;  %653 = vmatpush.msra.mxu1 %v525_v12  ;;  %v538_v24 = vld [vmem:[#allocation7 + $0x148] sm:$0xff]  ;;  %v521_v27 = vld [vmem:[#allocation7 + $0xc0] sm:$0xff]  ;;  %v174_v30 = vmul.f32 1.442695, %v173_v22  ;;  %v520_v31 = vld [vmem:[#allocation7 + $0xb8] sm:$0xff]  ;;  %v1191_v11 = vperm.slane %v1170_v15, 0 }
  0x14   :  { %694 = vmatpush.msra.mxu2 %v541_v13  ;;  %613 = vmatpush.msra.mxu0 %v508_v14  ;;  %v537_v28 = vld [vmem:[#allocation7 + $0x140] sm:$0xff]  ;;  %v536_v32 = vld [vmem:[#allocation7 + $0x138] sm:$0xff]  ;;  %v503_v33 = vld [vmem:[#allocation7 + $0x30] sm:$0xff]  ;;  %v185_v34 = vmul.f32 1.442695, %v184_v25  ;;  %v1194_v12 = vperm.slane %v1170_v15, 4 }
  0x15   :  { %984 = vmatpush.msra.mxu3 %v508_v14  ;;  %654 = vmatpush.msra.mxu1 %v524_v16  ;;  %v519_v35 = vld [vmem:[#allocation7 + $0xb0] sm:$0xff]  ;;  %v1174_v36 = vld [vmem:[#allocation4] sm:$0xff]  ;;  %v1180_v41 = vld [vmem:[#allocation4 + $0x10] sm:$0xff]  ;;  %1034 = vpow2.f32 %v174_v30  ;;  %1992 = vst [vmem:[#allocation13_spill] sm:$0xff] %v1191_v11 }
  0x16   :  { %695 = vmatpush.msra.mxu2 %v540_v17  ;;  %614 = vmatpush.msra.mxu0 %v507_v18  ;;  %v1176_v37 = vld [vmem:[#allocation4 + $0x8] sm:$0xff]  ;;  %v60_v39 = vmul.f32 0.06666667, %v1174_v36  ;;  %v109_v40 = vmul.f32 0.26666668, %v1174_v36  ;;  %v502_v42 = vld [vmem:[#allocation7 + $0x28] sm:$0xff]  ;;  %1036 = vpow2.f32 %v185_v34  ;;  %vm203_vm1 = vcmp.ge.f32.partialorder %v1191_v11, %v1174_v36 }
  0x17   :  { %985 = vmatpush.msra.mxu3 %v507_v18  ;;  %655 = vmatpush.msra.mxu1 %v523_v19  ;;  %v535_v38 = vld [vmem:[#allocation7 + $0x130] sm:$0xff]  ;;  %v518_v43 = vld [vmem:[#allocation7 + $0xa8] sm:$0xff]  ;;  %v61_v44 = vmul.f32 0.06666667, %v1176_v37  ;;  %v110_v45 = vmul.f32 0.26666668, %v1176_v37  ;;  %vm231_vm2 = vcmp.ge.f32.partialorder %v1194_v12, %v1174_v36  ;;  %vm204_vm4 = vcmp.ge.f32.partialorder %v1191_v11, %v1176_v37 }
  0x18   :  { %696 = vmatpush.msra.mxu2 %v539_v20  ;;  %615 = vmatpush.msra.mxu0 %v506_v21  ;;  %v534_v46 = vld [vmem:[#allocation7 + $0x128] sm:$0xff]  ;;  %v501_v47 = vld [vmem:[#allocation7 + $0x20] sm:$0xff]  ;;  %v67_v49 = vmin.f32 %v60_v39, 80.0  ;;  %v116_v50 = vmin.f32 %v109_v40, 80.0  ;;  %v62_v53 = vmul.f32 0.06666667, %v1180_v41  ;;  %vm205_vm6 = vcmp.ge.f32.partialorder %v1191_v11, %v1180_v41 }
  0x19   :  { %986 = vmatpush.msra.mxu3 %v506_v21  ;;  %656 = vmatpush.msra.mxu1 %v522_v23  ;;  %v517_v48 = vld [vmem:[#allocation7 + $0xa0] sm:$0xff]  ;;  %v68_v51 = vmin.f32 %v61_v44, 80.0  ;;  %v117_v52 = vmin.f32 %v110_v45, 80.0  ;;  %v111_v54 = vmul.f32 0.26666668, %v1180_v41  ;;  %v500_v56 = vld [vmem:[#allocation7 + $0x18] sm:$0xff] }
  0x1a   :  { %697 = vmatpush.msra.mxu2 %v538_v24  ;;  %616 = vmatpush.msra.mxu0 %v505_v26  ;;  %v533_v55 = vld [vmem:[#allocation7 + $0x120] sm:$0xff]  ;;  %v74_v57 = vmul.f32 1.442695, %v67_v49  ;;  %v123_v58 = vmul.f32 1.442695, %v116_v50  ;;  %v69_v61 = vmin.f32 %v62_v53, 80.0 }
  0x1b   :  { %987 = vmatpush.msra.mxu3 %v505_v26  ;;  %657 = vmatpush.msra.mxu1 %v521_v27  ;;  %v76_v59 = vmul.f32 1.442695, %v68_v51  ;;  %v125_v60 = vmul.f32 1.442695, %v117_v52  ;;  %v118_v62 = vmin.f32 %v111_v54, 80.0  ;;  %v516_v63 = vld [vmem:[#allocation7 + $0x98] sm:$0xff]  ;;  %v1186_v1 = vpop.eup %1034 }
  0x1c   :  { %698 = vmatpush.msra.mxu2 %v537_v28  ;;  %617 = vmatpush.msra.mxu0 %v504_v29  ;;  %v532_v0 = vld [vmem:[#allocation7 + $0x118] sm:$0xff]  ;;  %1038 = vpow2.f32 %v74_v57  ;;  %v499_v2 = vld [vmem:[#allocation7 + $0x10] sm:$0xff]  ;;  %v78_v3 = vmul.f32 1.442695, %v69_v61  ;;  %v1188_v5 = vpop.eup %1036  ;;  %v498_v8 = vld [vmem:[#allocation7 + $0x8] sm:$0xff]  ;;  %v1197_v14 = vperm.slane %v1186_v1, 0 }
  0x1d   :  { %988 = vmatpush.msra.mxu3 %v504_v29  ;;  %658 = vmatpush.msra.mxu1 %v520_v31  ;;  %1040 = vpow2.f32 %v123_v58  ;;  %v127_v4 = vmul.f32 1.442695, %v118_v62  ;;  %v515_v6 = vld [vmem:[#allocation7 + $0x90] sm:$0xff]  ;;  %v514_v9 = vld [vmem:[#allocation7 + $0x88] sm:$0xff]  ;;  %v497_v13 = vld [vmem:[#allocation7] sm:$0xff]  ;;  %v1200_v16 = vperm.slane %v1186_v1, 4 }
  0x1e   :  { %699 = vmatpush.msra.mxu2 %v536_v32  ;;  %618 = vmatpush.msra.mxu0 %v503_v33  ;;  %v531_v7 = vld [vmem:[#allocation7 + $0x110] sm:$0xff]  ;;  %1042 = vpow2.f32 %v76_v59  ;;  %v530_v10 = vld [vmem:[#allocation7 + $0x108] sm:$0xff]  ;;  %v1203_v17 = vperm.slane %v1186_v1, 1  ;;  %v513_v19 = vld [vmem:[#allocation7 + $0x80] sm:$0xff]  ;;  %vm53_vm0 = vcmp.ge.f32.partialorder %v1174_v36, 0.0  ;;  %v1207_v21 = vperm.slane %v1188_v5, 0 }
  0x1f   :  { %989 = vmatpush.msra.mxu3 %v503_v33  ;;  %659 = vmatpush.msra.mxu1 %v519_v35  ;;  %1044 = vpow2.f32 %v125_v60  ;;  %v529_v20 = vld [vmem:[#allocation7 + $0x100] sm:$0xff]  ;;  %v1210_v22 = vperm.slane %v1188_v5, 4  ;;  %v1213_v23 = vperm.slane %v1188_v5, 1  ;;  %v560_v26 = vld [vmem:[#allocation7 + $0x1f8] sm:$0xff]  ;;  %v1218_v28 = vperm.slane %v1186_v1, 5  ;;  %v559_v39 = vld [vmem:[#allocation7 + $0x1f0] sm:$0xff] }
  0x20   :  { %700 = vmatpush.msra.mxu2 %v535_v38  ;;  %619 = vmatpush.msra.mxu0 %v502_v42  ;;  %1046 = vpow2.f32 %v78_v3  ;;  %1993 = vst [vmem:[#allocation14_spill] sm:$0xff] %v1203_v17  ;;  %v1215_v27 = vld [vmem:[#allocation7 + $0x378] sm:$0xff]  ;;  %v1221_v29 = vperm.slane %v1188_v5, 5  ;;  %vm54_vm3 = vcmp.ge.f32.partialorder %v1176_v37, 0.0  ;;  %vm55_vm5 = vcmp.ge.f32.partialorder %v1180_v41, 0.0  ;;  %v1237_v40 = vld [vmem:[#allocation7 + $0x370] sm:$0xff] }
  0x21   :  { %990 = vmatpush.msra.mxu3 %v502_v42  ;;  %660 = vmatpush.msra.mxu1 %v518_v43  ;;  %1048 = vpow2.f32 %v127_v4  ;;  %1994 = vst [vmem:[#allocation15_spill] sm:$0xff] %v1213_v23  ;;  %v576_v32 = vld [vmem:[#allocation7 + $0x278] sm:$0xff]  ;;  %v558_v54 = vld [vmem:[#allocation7 + $0x1e8] sm:$0xff]  ;;  %v1279_v3 = vld [vmem:[#allocation4 + $0x18] sm:$0xff] }
  0x22   :  { %701 = vmatpush.msra.mxu2 %v534_v46  ;;  %620 = vmatpush.msra.mxu0 %v501_v47  ;;  %v1039_v18 = vpop.eup %1038  ;;  %1995 = vst [vmem:[#allocation16_spill] sm:$0xff] %v1218_v28  ;;  %v1228_v33 = vld [vmem:[#allocation7 + $0x2f8] sm:$0xff]  ;;  %vm56_vm15 = vcmp.ge.f32.partialorder %v1279_v3, 0.0 }
  0x23   :  { %991 = vmatpush.msra.mxu3 %v501_v47  ;;  %661 = vmatpush.msra.mxu1 %v517_v48  ;;  %v1041_v24 = vpop.eup %1040  ;;  %v88_v25 = vmul.f32 2.1165347, %v1039_v18  ;;  %1996 = vst [vmem:[#allocation17_spill] sm:$0xff] %v1221_v29  ;;  %v575_v47 = vld [vmem:[#allocation7 + $0x270] sm:$0xff]  ;;  %v1301_v18 = vperm.slane %v1170_v15, 1 }
  0x24   :  { %702 = vmatpush.msra.mxu2 %v533_v55  ;;  %621 = vmatpush.msra.mxu0 %v500_v56  ;;  %v1043_v30 = vpop.eup %1042  ;;  %v137_v31 = vmul.f32 2.1165347, %v1041_v24  ;;  %v1248_v48 = vld [vmem:[#allocation7 + $0x2f0] sm:$0xff]  ;;  %v1259_v55 = vld [vmem:[#allocation7 + $0x368] sm:$0xff]  ;;  %v1308_v24 = vperm.slane %v1170_v15, 5 }
  0x25   :  { %992 = vmatpush.msra.mxu3 %v500_v56  ;;  %662 = vmatpush.msra.mxu1 %v516_v63  ;;  %v1045_v34 = vpop.eup %1044  ;;  %v1232_v35 = vsel %vm53_vm0, %v88_v25, 0.0  ;;  %v89_v38 = vmul.f32 2.1165347, %v1043_v30  ;;  %1997 = vst [vmem:[#allocation18_spill] sm:$0xff] %v1301_v18  ;;  %v1310_v25 = vld [vmem:[#allocation7 + $0x2e8] sm:$0xff]  ;;  %vm210_vm7 = vcmp.ge.f32.partialorder %v1301_v18, %v1174_v36  ;;  %vm211_vm9 = vcmp.ge.f32.partialorder %v1301_v18, %v1176_v37 }
  0x26   :  { %703 = vmatpush.msra.mxu2 %v532_v0  ;;  %622 = vmatpush.msra.mxu0 %v499_v2  ;;  %v1047_v42 = vpop.eup %1046  ;;  %v1241_v43 = vsel %vm53_vm0, %v137_v31, 0.0  ;;  %v266_v44 = vmul.f32 %v1197_v14, %v1232_v35  ;;  %v294_v45 = vmul.f32 %v1200_v16, %v1232_v35  ;;  %v138_v46 = vmul.f32 2.1165347, %v1045_v34  ;;  %v574_v0 = vld [vmem:[#allocation7 + $0x268] sm:$0xff]  ;;  %1998 = vst [vmem:[#allocation19_spill] sm:$0xff] %v1308_v24 }
  0x27   :  { %993 = vmatpush.msra.mxu3 %v499_v2  ;;  %663 = vmatpush.msra.mxu1 %v515_v6  ;;  %v1049_v49 = vpop.eup %1048  ;;  %v329_v50 = vmul.f32 %v1207_v21, %v1241_v43  ;;  %v357_v51 = vmul.f32 %v1210_v22, %v1241_v43  ;;  %v1256_v52 = vsel %vm54_vm3, %v89_v38, 0.0  ;;  %v90_v53 = vmul.f32 2.1165347, %v1047_v42  ;;  %v557_v2 = vld [vmem:[#allocation7 + $0x1e0] sm:$0xff]  ;;  %v572_v38 = vld [vmem:[#allocation7 + $0x258] sm:$0xff] }
  0x28   :  { %704 = vmatpush.msra.mxu2 %v531_v7  ;;  %623 = vmatpush.msra.mxu0 %v498_v8  ;;  %v1263_v56 = vsel %vm54_vm3, %v138_v46, 0.0  ;;  %v267_v57 = vmul.f32 %v1197_v14, %v1256_v52  ;;  %v139_v58 = vmul.f32 2.1165347, %v1049_v49  ;;  %v1270_v59 = vmul.f32 %v1203_v17, %v1232_v35  ;;  %v1334_v46 = vld [vmem:[#allocation7 + $0x360] sm:$0xff] }
  0x29   :  { %994 = vmatpush.msra.mxu3 %v498_v8  ;;  %664 = vmatpush.msra.mxu1 %v514_v9  ;;  %v385_v60 = vsub.f32 %v266_v44, %v329_v50  ;;  %v413_v61 = vsub.f32 %v294_v45, %v357_v51  ;;  %v330_v62 = vmul.f32 %v1207_v21, %v1263_v56  ;;  %v1276_v63 = vsel %vm55_vm5, %v90_v53, 0.0  ;;  %v1339_v49 = vld [vmem:[#allocation7 + $0x2e0] sm:$0xff] }
  0x2a   :  { %705 = vmatpush.msra.mxu2 %v530_v10  ;;  %624 = vmatpush.msra.mxu0 %v497_v13  ;;  %v1283_v4 = vsel %vm55_vm5, %v139_v58, 0.0  ;;  %v268_v6 = vmul.f32 %v1197_v14, %v1276_v63  ;;  %v336_v7 = vmul.f32 %v1213_v23, %v1241_v43  ;;  %v301_v8 = vmul.f32 %v1218_v28, %v1232_v35 }
  0x2b   :  { %995 = vmatpush.msra.mxu3 %v497_v13  ;;  %665 = vmatpush.msra.mxu1 %v513_v19  ;;  %v386_v9 = vsub.f32 %v267_v57, %v330_v62  ;;  %v331_v10 = vmul.f32 %v1207_v21, %v1283_v4  ;;  %v573_v13 = vld [vmem:[#allocation7 + $0x260] sm:$0xff]  ;;  %v364_v19 = vmul.f32 %v1221_v29, %v1241_v43  ;;  %v63_v30 = vmul.f32 0.06666667, %v1279_v3  ;;  %v554_v57 = vld [vmem:[#allocation7 + $0x1c8] sm:$0xff] }
  0x2c   :  { %706 = vmatpush.msra.mxu2 %v529_v20  ;;  %773 = vmatpush.msrb.mxu0 %v576_v32  ;;  %v556_v20 = vld [vmem:[#allocation7 + $0x1d8] sm:$0xff]  ;;  %v274_v32 = vmul.f32 %v1203_v17, %v1256_v52  ;;  %v337_v34 = vmul.f32 %v1213_v23, %v1263_v56  ;;  %v1324_v42 = vperm.slane %v1188_v5, 2  ;;  %v1328_v44 = vmul.f32 %v1203_v17, %v1276_v63  ;;  %v570_v62 = vld [vmem:[#allocation7 + $0x248] sm:$0xff] }
  0x2d   :  { %732 = vmatpush.msrb.mxu3 %v560_v26  ;;  %996 = vmatpush.msrb.mxu1 %v1228_v33  ;;  %v1313_v26 = vperm.slane %v1186_v1, 2  ;;  %v387_v31 = vsub.f32 %v268_v6, %v331_v10  ;;  %v1332_v45 = vmul.f32 %v1213_v23, %v1283_v4  ;;  %v70_v50 = vmin.f32 %v63_v30, 80.0  ;;  %v569_v10 = vld [vmem:[#allocation7 + $0x240] sm:$0xff] }
  0x2e   :  { %855 = vmatpush.msrb.mxu2 %v1215_v27  ;;  %774 = vmatpush.msrb.mxu0 %v575_v47  ;;  %2000 = vst [vmem:[#allocation21_spill] sm:$0xff] %v1324_v42  ;;  %v1337_v47 = vperm.slane %v1186_v1, 6  ;;  %v392_v51 = vsub.f32 %v1270_v59, %v336_v7  ;;  %v420_v53 = vsub.f32 %v301_v8, %v364_v19  ;;  %v1347_v58 = vperm.slane %v1188_v5, 6 }
  0x2f   :  { %733 = vmatpush.msrb.mxu3 %v559_v39  ;;  %997 = vmatpush.msrb.mxu1 %v1248_v48  ;;  %1999 = vst [vmem:[#allocation20_spill] sm:$0xff] %v1313_v26  ;;  %v555_v39 = vld [vmem:[#allocation7 + $0x1d0] sm:$0xff]  ;;  %vm238_vm8 = vcmp.ge.f32.partialorder %v1308_v24, %v1174_v36  ;;  %v393_v59 = vsub.f32 %v274_v32, %v337_v34  ;;  %v1385_v32 = vperm.slane %v1170_v15, 2  ;;  %v1388_v34 = vperm.slane %v1170_v15, 6 }
  0x30   :  { %856 = vmatpush.msrb.mxu2 %v1237_v40  ;;  %924 = vmatmul.msk.f32.vlgmr.msra.gmra.mxu0 %vm203_vm1, %v385_v60  ;;  %2001 = vst [vmem:[#allocation22_spill] sm:$0xff] %v1347_v58  ;;  %v112_v60 = vmul.f32 0.26666668, %v1279_v3  ;;  %v394_v6 = vsub.f32 %v1328_v44, %v1332_v45  ;;  %v1362_v7 = vmul.f32 %v1313_v26, %v1232_v35 }
  0x31   :  { %734 = vmatpush.msrb.mxu3 %v558_v54  ;;  %775 = vmatpush.msrb.mxu0 %v574_v0  ;;  %v571_v54 = vld [vmem:[#allocation7 + $0x250] sm:$0xff]  ;;  %v553_v0 = vld [vmem:[#allocation7 + $0x1c0] sm:$0xff]  ;;  %v1366_v8 = vmul.f32 %v1324_v42, %v1241_v43  ;;  %v371_v19 = vmul.f32 %v1347_v58, %v1241_v43  ;;  %vm212_vm10 = vcmp.ge.f32.partialorder %v1301_v18, %v1180_v41 }
  0x32   :  { %857 = vmatpush.msrb.mxu2 %v1259_v55  ;;  %928 = vmatmul.msk.f32.vlgmr.msra.gmra.mxu3 %vm231_vm2, %v413_v61  ;;  %v80_v61 = vmul.f32 1.442695, %v70_v50  ;;  %2002 = vst [vmem:[#allocation23_spill] sm:$0xff] %v1388_v34  ;;  %v281_v44 = vmul.f32 %v1313_v26, %v1256_v52  ;;  %v344_v45 = vmul.f32 %v1324_v42, %v1263_v56  ;;  %v568_v50 = vld [vmem:[#allocation7 + $0x238] sm:$0xff] }
  0x33   :  { %735 = vmatpush.msrb.mxu3 %v557_v2  ;;  %932 = vmatmul.msk.f32.vlgmr.msra.gmra.mxu1 %vm204_vm4, %v386_v9  ;;  %v119_v2 = vmin.f32 %v112_v60, 80.0  ;;  %v1368_v9 = vld [vmem:[#allocation7 + $0x358] sm:$0xff]  ;;  %v1411_v60 = vperm.slane %v1186_v1, 7  ;;  %vm217_vm11 = vcmp.ge.f32.partialorder %v1385_v32, %v1174_v36  ;;  %vm245_vm12 = vcmp.ge.f32.partialorder %v1388_v34, %v1174_v36 }
  0x34   :  { %776 = vmatpush.msrb.mxu0 %v573_v13  ;;  %940 = vmatmul.msk.f32.vlgmr.msra.gmra.mxu2 %vm205_vm6, %v387_v31  ;;  %v308_v13 = vmul.f32 %v1337_v47, %v1232_v35  ;;  %1050 = vpow2.f32 %v80_v61  ;;  %v1380_v31 = vld [vmem:[#allocation4 + $0x20] sm:$0xff]  ;;  %v1414_v61 = vperm.slane %v1188_v5, 7  ;;  %vm218_vm13 = vcmp.ge.f32.partialorder %v1385_v32, %v1176_v37 }
  0x35   :  { %736 = vmatpush.msrb.mxu3 %v556_v20  ;;  %998 = vmatpush.msrb.mxu1 %v1310_v25  ;;  %v552_v20 = vld [vmem:[#allocation7 + $0x1b8] sm:$0xff]  ;;  %v129_v30 = vmul.f32 1.442695, %v119_v2  ;;  %v282_v2 = vmul.f32 %v1313_v26, %v1276_v63  ;;  %vm219_vm14 = vcmp.ge.f32.partialorder %v1385_v32, %v1180_v41  ;;  %vm57_vm3 = vcmp.ge.f32.partialorder %v1380_v31, 0.0 }
  0x36   :  { %777 = vmatpush.msrb.mxu0 %v572_v38  ;;  %858 = vmatpush.msrb.mxu2 %v1334_v46  ;;  %v1390_v38 = vld [vmem:[#allocation7 + $0x2d8] sm:$0xff]  ;;  %vm206_vm5 = vcmp.ge.f32.partialorder %v1191_v11, %v1279_v3  ;;  %vm207_vm6 = vcmp.ge.f32.partialorder %v1191_v11, %v1380_v31 }
  0x37   :  { %737 = vmatpush.msrb.mxu3 %v555_v39  ;;  %999 = vmatpush.msrb.mxu1 %v1339_v49  ;;  %v1393_v39 = vperm.slane %v1186_v1, 3  ;;  %1052 = vpow2.f32 %v129_v30  ;;  %v567_v1 = vld [vmem:[#allocation7 + $0x230] sm:$0xff]  ;;  %v1617_v11 = vld [vmem:[#allocation7 + $0x298] sm:$0xff] }
  0x38   :  { %778 = vmatpush.msrb.mxu0 %v571_v54  ;;  %859 = vmatpush.msrb.mxu2 %v1368_v9  ;;  %v399_v54 = vsub.f32 %v1362_v7, %v1366_v8  ;;  %v345_v7 = vmul.f32 %v1324_v42, %v1283_v4  ;;  %v550_v8 = vld [vmem:[#allocation7 + $0x1a8] sm:$0xff] }
  0x39   :  { %738 = vmatpush.msrb.mxu3 %v554_v57  ;;  %925 = vmatmul.msk.f32.gmra.mxu0 %vm210_vm7, %v392_v51  ;;  %v551_v51 = vld [vmem:[#allocation7 + $0x1b0] sm:$0xff]  ;;  %vm232_vm7 = vcmp.ge.f32.partialorder %v1194_v12, %v1176_v37 }
  0x3a   :  { %929 = vmatmul.msk.f32.gmra.mxu3 %vm238_vm8, %v420_v53  ;;  %779 = vmatpush.msrb.mxu0 %v570_v62  ;;  %v1404_v53 = vperm.slane %v1188_v5, 3  ;;  %v1408_v57 = vld [vmem:[#allocation7 + $0x350] sm:$0xff]  ;;  %v64_v62 = vmul.f32 0.06666667, %v1380_v31  ;;  %v113_v5 = vmul.f32 0.26666668, %v1380_v31  ;;  %vm233_vm8 = vcmp.ge.f32.partialorder %v1194_v12, %v1180_v41 }
  0x3b   :  { %739 = vmatpush.msrb.mxu3 %v553_v0  ;;  %933 = vmatmul.msk.f32.gmra.mxu1 %vm211_vm9, %v393_v59  ;;  %2003 = vst [vmem:[#allocation24_spill] sm:$0xff] %v1408_v57  ;;  %v1416_v59 = vld [vmem:[#allocation7 + $0x2d0] sm:$0xff]  ;;  %v427_v0 = vsub.f32 %v308_v13, %v371_v19  ;;  %v400_v13 = vsub.f32 %v281_v44, %v344_v45  ;;  %v566_v19 = vld [vmem:[#allocation7 + $0x228] sm:$0xff] }
  0x3c   :  { %780 = vmatpush.msrb.mxu0 %v569_v10  ;;  %2004 = vst [vmem:[#allocation25_spill] sm:$0xff] %v1416_v59  ;;  %941 = vmatmul.msk.f32.gmra.mxu2 %vm212_vm10, %v394_v6  ;;  %v71_v6 = vmin.f32 %v64_v62, 80.0  ;;  %v1051_v10 = vpop.eup %1050  ;;  %v120_v30 = vmin.f32 %v113_v5, 80.0  ;;  %v350_v44 = vmul.f32 %v1404_v53, %v1241_v43  ;;  %v1445_v45 = vld [vmem:[#allocation7 + $0x348] sm:$0xff]  ;;  %v315_v5 = vmul.f32 %v1411_v60, %v1232_v35 }
  0x3d   :  { %740 = vmatpush.msrb.mxu3 %v552_v20  ;;  %1000 = vmatpush.msrb.mxu1 %v1390_v38  ;;  %v549_v20 = vld [vmem:[#allocation7 + $0x1a0] sm:$0xff]  ;;  %v1053_v42 = vpop.eup %1052  ;;  %v91_v58 = vmul.f32 2.1165347, %v1051_v10  ;;  %vm239_vm9 = vcmp.ge.f32.partialorder %v1308_v24, %v1176_v37  ;;  %vm213_vm10 = vcmp.ge.f32.partialorder %v1301_v18, %v1279_v3 }
  0x3e   :  { %781 = vmatpush.msrb.mxu0 %v568_v50  ;;  %860 = vmatpush.msrb.mxu2 %v1408_v57  ;;  %v1439_v50 = vperm.slane %v1170_v15, 3  ;;  %v82_v62 = vmul.f32 1.442695, %v71_v6  ;;  %v548_v57 = vld [vmem:[#allocation7 + $0x198] sm:$0xff]  ;;  %v131_v26 = vmul.f32 1.442695, %v120_v30 }
  0x3f   :  { %741 = vmatpush.msrb.mxu3 %v551_v51  ;;  %1001 = vmatpush.msrb.mxu1 %v1416_v59  ;;  %v287_v51 = vmul.f32 %v1393_v39, %v1232_v35  ;;  %v378_v59 = vmul.f32 %v1414_v61, %v1241_v43  ;;  %v1458_v6 = vperm.slane %v1170_v15, 7  ;;  %v140_v34 = vmul.f32 2.1165347, %v1053_v42  ;;  %v547_v15 = vld [vmem:[#allocation7 + $0x190] sm:$0xff] }
  0x40   :  { %782 = vmatpush.msrb.mxu0 %v567_v1  ;;  %v401_v1 = vsub.f32 %v282_v2, %v345_v7  ;;  %1054 = vpow2.f32 %v82_v62  ;;  %v288_v35 = vmul.f32 %v1393_v39, %v1256_v52  ;;  %v351_v43 = vmul.f32 %v1404_v53, %v1263_v56  ;;  %861 = vmatpush.msrb.mxu2 %v1445_v45  ;;  %v1471_v2 = vld [vmem:[#allocation7 + $0x340] sm:$0xff] }
  0x41   :  { %742 = vmatpush.msrb.mxu3 %v550_v8  ;;  %926 = vmatmul.msk.f32.gmra.mxu0 %vm217_vm11, %v399_v54  ;;  %v565_v8 = vld [vmem:[#allocation7 + $0x220] sm:$0xff]  ;;  %v1460_v54 = vld [vmem:[#allocation7 + $0x2c8] sm:$0xff]  ;;  %1056 = vpow2.f32 %v131_v26  ;;  %v406_v42 = vsub.f32 %v287_v51, %v350_v44  ;;  %v434_v10 = vsub.f32 %v315_v5, %v378_v59  ;;  %vm224_vm0 = vcmp.ge.f32.partialorder %v1439_v50, %v1174_v36 }
  0x42   :  { %930 = vmatmul.msk.f32.gmra.mxu3 %vm245_vm12, %v427_v0  ;;  %783 = vmatpush.msrb.mxu0 %v566_v19  ;;  %v564_v0 = vld [vmem:[#allocation7 + $0x218] sm:$0xff]  ;;  %v1473_v7 = vld [vmem:[#allocation7 + $0x2c0] sm:$0xff]  ;;  %v352_v19 = vmul.f32 %v1404_v53, %v1283_v4  ;;  %v546_v26 = vld [vmem:[#allocation7 + $0x188] sm:$0xff]  ;;  %vm252_vm1 = vcmp.ge.f32.partialorder %v1458_v6, %v1174_v36  ;;  %v1493_v59 = vsel %vm56_vm15, %v140_v34, 0.0  ;;  %v407_v30 = vsub.f32 %v288_v35, %v351_v43 }
  0x43   :  { %743 = vmatpush.msrb.mxu3 %v549_v20  ;;  %934 = vmatmul.msk.f32.gmra.mxu1 %vm218_vm13, %v400_v13  ;;  %v289_v13 = vmul.f32 %v1393_v39, %v1276_v63  ;;  %v563_v20 = vld [vmem:[#allocation7 + $0x210] sm:$0xff]  ;;  %v562_v51 = vld [vmem:[#allocation7 + $0x208] sm:$0xff]  ;;  %v545_v44 = vld [vmem:[#allocation7 + $0x180] sm:$0xff]  ;;  %vm225_vm2 = vcmp.ge.f32.partialorder %v1439_v50, %v1176_v37  ;;  %v332_v5 = vmul.f32 %v1207_v21, %v1493_v59 }
  0x44   :  { %784 = vmatpush.msrb.mxu0 %v565_v8  ;;  %942 = vmatmul.msk.f32.gmra.mxu2 %vm219_vm14, %v401_v1  ;;  %v561_v1 = vld [vmem:[#allocation7 + $0x200] sm:$0xff]  ;;  %v1510_v43 = vld [vmem:[#allocation7 + $0x338] sm:$0xff]  ;;  %vm226_vm4 = vcmp.ge.f32.partialorder %v1439_v50, %v1180_v41  ;;  %vm214_vm11 = vcmp.ge.f32.partialorder %v1301_v18, %v1380_v31  ;;  %vm240_vm12 = vcmp.ge.f32.partialorder %v1308_v24, %v1180_v41 }
  0x45   :  { %744 = vmatpush.msrb.mxu3 %v548_v57  ;;  %1002 = vmatpush.msrb.mxu1 %v1460_v54  ;;  %v1489_v57 = vsel %vm56_vm15, %v91_v58, 0.0  ;;  %v408_v34 = vsub.f32 %v289_v13, %v352_v19  ;;  %v1530_v19 = vld [vmem:[#allocation7 + $0x2b8] sm:$0xff]  ;;  %vm220_vm14 = vcmp.ge.f32.partialorder %v1385_v32, %v1279_v3  ;;  %vm221_vm15 = vcmp.ge.f32.partialorder %v1385_v32, %v1380_v31 }
  0x46   :  { %785 = vmatpush.msrb.mxu0 %v564_v0  ;;  %862 = vmatpush.msrb.mxu2 %v1471_v2  ;;  %v1055_v62 = vpop.eup %1054  ;;  %v269_v8 = vmul.f32 %v1197_v14, %v1489_v57  ;;  %v1512_v0 = vld [vmem:[#allocation4 + $0x28] sm:$0xff] }
  0x47   :  { %745 = vmatpush.msrb.mxu3 %v547_v15  ;;  %1003 = vmatpush.msrb.mxu1 %v1473_v7  ;;  %v1057_v58 = vpop.eup %1056  ;;  %v92_v35 = vmul.f32 2.1165347, %v1055_v62  ;;  %v295_v15 = vmul.f32 %v1200_v16, %v1256_v52 }
  0x48   :  { %786 = vmatpush.msrb.mxu0 %v563_v20  ;;  %v141_v36 = vmul.f32 2.1165347, %v1057_v58  ;;  %v359_v20 = vmul.f32 %v1210_v22, %v1283_v4  ;;  %863 = vmatpush.msrb.mxu2 %v1510_v43  ;;  %v1550_v58 = vld [vmem:[#allocation7 + $0x2b0] sm:$0xff] }
  0x49   :  { %746 = vmatpush.msrb.mxu3 %v546_v26  ;;  %927 = vmatmul.msk.f32.gmra.mxu0 %vm224_vm0, %v406_v42  ;;  %v358_v42 = vmul.f32 %v1210_v22, %v1263_v56  ;;  %v1527_v13 = vsel %vm57_vm3, %v92_v35, 0.0  ;;  %v276_v35 = vmul.f32 %v1203_v17, %v1489_v57 }
  0x4a   :  { %931 = vmatmul.msk.f32.gmra.mxu3 %vm252_vm1, %v434_v10  ;;  %787 = vmatpush.msrb.mxu0 %v562_v51  ;;  %v296_v10 = vmul.f32 %v1200_v16, %v1276_v63  ;;  %v1536_v26 = vsel %vm57_vm3, %v141_v36, 0.0  ;;  %v1541_v51 = vld [vmem:[#allocation7 + $0x330] sm:$0xff]  ;;  %v1569_v36 = vld [vmem:[#allocation4 + $0x30] sm:$0xff]  ;;  %vm227_vm3 = vcmp.ge.f32.partialorder %v1439_v50, %v1279_v3 }
  0x4b   :  { %747 = vmatpush.msrb.mxu3 %v545_v44  ;;  %935 = vmatmul.msk.f32.gmra.mxu1 %vm225_vm2, %v407_v30  ;;  %v270_v30 = vmul.f32 %v1197_v14, %v1527_v13  ;;  %v65_v44 = vmul.f32 0.06666667, %v1512_v0  ;;  %v333_v62 = vmul.f32 %v1207_v21, %v1536_v26  ;;  %vm59_vm0 = vcmp.ge.f32.partialorder %v1569_v36, 0.0 }
  0x4c   :  { %788 = vmatpush.msrb.mxu0 %v561_v1  ;;  %943 = vmatmul.msk.f32.gmra.mxu2 %vm226_vm4, %v408_v34  ;;  %v414_v1 = vsub.f32 %v295_v15, %v358_v42  ;;  %v277_v15 = vmul.f32 %v1203_v17, %v1527_v13  ;;  %v1583_v42 = vld [vmem:[#allocation7 + $0x2a8] sm:$0xff]  ;;  %v115_v17 = vmul.f32 0.26666668, %v1569_v36  ;;  %vm58_vm2 = vcmp.ge.f32.partialorder %v1512_v0, 0.0 }
  0x4d   :  { %1012 = vmatpush.msra.mxu3 %v1215_v27  ;;  %v388_v27 = vsub.f32 %v269_v8, %v332_v5  ;;  %1004 = vmatpush.msrb.mxu1 %v1530_v19  ;;  %v389_v34 = vsub.f32 %v270_v30, %v333_v62  ;;  %v1560_v8 = vld [vmem:[#allocation7 + $0x328] sm:$0xff]  ;;  %v415_v5 = vsub.f32 %v296_v10, %v359_v20  ;;  %v1585_v10 = vld [vmem:[#allocation7 + $0x320] sm:$0xff] }
  0x4e   :  { %814 = vmatpush.msra.mxu0 %v1228_v33  ;;  %864 = vmatpush.msrb.mxu2 %v1541_v51  ;;  %v114_v33 = vmul.f32 0.26666668, %v1512_v0  ;;  %v302_v20 = vmul.f32 %v1218_v28, %v1256_v52  ;;  %v365_v30 = vmul.f32 %v1221_v29, %v1263_v56  ;;  %v1603_v62 = vld [vmem:[#allocation7 + $0x2a0] sm:$0xff]  ;;  %vm228_vm4 = vcmp.ge.f32.partialorder %v1439_v50, %v1380_v31 }
  0x4f   :  { %1013 = vmatpush.msra.mxu3 %v1237_v40  ;;  %1005 = vmatpush.msrb.mxu1 %v1550_v58  ;;  %v72_v40 = vmin.f32 %v65_v44, 80.0  ;;  %v303_v44 = vmul.f32 %v1218_v28, %v1276_v63 }
  0x50   :  { %815 = vmatpush.msra.mxu0 %v1248_v48  ;;  %v339_v48 = vmul.f32 %v1213_v23, %v1493_v59  ;;  %865 = vmatpush.msrb.mxu2 %v1560_v8  ;;  %v421_v28 = vsub.f32 %v302_v20, %v365_v30  ;;  %v2007_v20 = vld [vmem:[#allocation24_spill] sm:$0xff] }
  0x51   :  { %1014 = vmatpush.msra.mxu3 %v1259_v55  ;;  %956 = vmatmul.msk.f32.vlgmr.msrb.gmra.mxu0 %vm207_vm6, %v389_v34  ;;  %v340_v55 = vmul.f32 %v1213_v23, %v1536_v26  ;;  %v121_v34 = vmin.f32 %v114_v33, 80.0  ;;  %v66_v23 = vmul.f32 0.06666667, %v1569_v36  ;;  %vm254_vm6 = vcmp.ge.f32.partialorder %v1458_v6, %v1180_v41 }
  0x52   :  { %948 = vmatmul.msk.f32.vlgmr.msrb.gmra.mxu3 %vm206_vm5, %v388_v27  ;;  %816 = vmatpush.msra.mxu0 %v1310_v25  ;;  %v366_v27 = vmul.f32 %v1221_v29, %v1283_v4  ;;  %v1608_v25 = vld [vmem:[#allocation7 + $0x318] sm:$0xff]  ;;  %vm253_vm5 = vcmp.ge.f32.partialorder %v1458_v6, %v1176_v37 }
  0x53   :  { %936 = vmatmul.msk.f32.gmra.mxu1 %vm232_vm7, %v414_v1  ;;  %1015 = vmatpush.msra.mxu3 %v1334_v46  ;;  %v84_v1 = vmul.f32 1.442695, %v72_v40  ;;  %v395_v46 = vsub.f32 %v276_v35, %v339_v48  ;;  %v396_v33 = vsub.f32 %v277_v15, %v340_v55  ;;  %v73_v29 = vmin.f32 %v66_v23, 80.0  ;;  %v1631_v23 = vld [vmem:[#allocation7 + $0x310] sm:$0xff] }
  0x54   :  { %1006 = vmatpush.msrb.mxu1 %v1583_v42  ;;  %866 = vmatpush.msrb.mxu2 %v1585_v10  ;;  %v422_v40 = vsub.f32 %v303_v44, %v366_v27  ;;  %v1627_v35 = vmul.f32 %v1337_v47, %v1256_v52  ;;  %v2005_v15 = vld [vmem:[#allocation22_spill] sm:$0xff]  ;;  %vm234_vm7 = vcmp.ge.f32.partialorder %v1194_v12, %v1279_v3 }
  0x55   :  { %944 = vmatmul.msk.f32.gmra.mxu2 %vm233_vm8, %v415_v5  ;;  %817 = vmatpush.msra.mxu0 %v1339_v49  ;;  %v122_v5 = vmin.f32 %v115_v17, 80.0  ;;  %v133_v49 = vmul.f32 1.442695, %v121_v34  ;;  %v86_v48 = vmul.f32 1.442695, %v73_v29  ;;  %v1635_v55 = vmul.f32 %v2005_v15, %v1263_v56  ;;  %v2008_v29 = vld [vmem:[#allocation21_spill] sm:$0xff] }
  0x56   :  { %1007 = vmatpush.msrb.mxu1 %v1603_v62  ;;  %1016 = vmatpush.msra.mxu3 %v1368_v9  ;;  %v2006_v9 = vld [vmem:[#allocation20_spill] sm:$0xff]  ;;  %1058 = vpow2.f32 %v84_v1  ;;  %v347_v27 = vmul.f32 %v2008_v29, %v1536_v26  ;;  %v1653_v34 = vld [vmem:[#allocation7 + $0x290] sm:$0xff]  ;;  %v1655_v1 = vld [vmem:[#allocation7 + $0x308] sm:$0xff]  ;;  %vm235_vm8 = vcmp.ge.f32.partialorder %v1194_v12, %v1380_v31 }
  0x57   :  { %867 = vmatpush.msrb.mxu2 %v1608_v25  ;;  %818 = vmatpush.msra.mxu0 %v1390_v38  ;;  %v283_v17 = vmul.f32 %v2006_v9, %v1489_v57  ;;  %v135_v30 = vmul.f32 1.442695, %v122_v5  ;;  %v346_v38 = vmul.f32 %v2008_v29, %v1493_v59  ;;  %v284_v44 = vmul.f32 %v2006_v9, %v1527_v13 }
  0x58   :  { %1008 = vmatpush.msrb.mxu1 %v1617_v11  ;;  %1017 = vmatpush.msra.mxu3 %v2007_v20  ;;  %1060 = vpow2.f32 %v86_v48  ;;  %v373_v5 = vmul.f32 %v2005_v15, %v1283_v4  ;;  %v1669_v48 = vld [vmem:[#allocation7 + $0x288] sm:$0xff]  ;;  %v2010_v20 = vld [vmem:[#allocation23_spill] sm:$0xff] }
  0x59   :  { %957 = vmatmul.msk.f32.gmra.mxu0 %vm214_vm11, %v396_v33  ;;  %868 = vmatpush.msrb.mxu2 %v1631_v23  ;;  %1062 = vpow2.f32 %v135_v30  ;;  %v310_v33 = vmul.f32 %v1337_v47, %v1276_v63  ;;  %vm246_vm13 = vcmp.ge.f32.partialorder %v2010_v20, %v1176_v37  ;;  %v428_v30 = vsub.f32 %v1627_v35, %v1635_v55 }
  0x5a   :  { %949 = vmatmul.msk.f32.gmra.mxu3 %vm213_vm10, %v395_v46  ;;  %v2009_v46 = vld [vmem:[#allocation25_spill] sm:$0xff]  ;;  %1064 = vpow2.f32 %v133_v49  ;;  %1009 = vmatpush.msrb.mxu1 %v1653_v34  ;;  %v1682_v49 = vld [vmem:[#allocation7 + $0x280] sm:$0xff]  ;;  %v1694_v35 = vmul.f32 %v2005_v15, %v1493_v59  ;;  %vm247_vm1 = vcmp.ge.f32.partialorder %v2010_v20, %v1180_v41 }
  0x5b   :  { %819 = vmatpush.msra.mxu0 %v2009_v46  ;;  %937 = vmatmul.msk.f32.gmra.mxu1 %vm239_vm9, %v421_v28  ;;  %v1677_v28 = vld [vmem:[#allocation7 + $0x300] sm:$0xff]  ;;  %v403_v46 = vsub.f32 %v284_v44, %v347_v27  ;;  %2011 = vst [vmem:[#allocation22_spill] sm:$0xff] %v1682_v49  ;;  %v291_v44 = vmul.f32 %v1393_v39, %v1527_v13 }
  0x5c   :  { %1018 = vmatpush.msra.mxu3 %v1445_v45  ;;  %869 = vmatpush.msrb.mxu2 %v1655_v1  ;;  %v402_v45 = vsub.f32 %v283_v17, %v346_v38  ;;  %v1059_v18 = vpop.eup %1058  ;;  %v290_v17 = vmul.f32 %v1393_v39, %v1489_v57  ;;  %v353_v38 = vmul.f32 %v1404_v53, %v1493_v59 }
  0x5d   :  { %945 = vmatmul.msk.f32.gmra.mxu2 %vm240_vm12, %v422_v40  ;;  %820 = vmatpush.msra.mxu0 %v1460_v54  ;;  %v1690_v40 = vmul.f32 %v1337_v47, %v1489_v57  ;;  %v429_v54 = vsub.f32 %v310_v33, %v373_v5  ;;  %v354_v27 = vmul.f32 %v1404_v53, %v1536_v26 }
  0x5e   :  { %1010 = vmatpush.msrb.mxu1 %v1669_v48  ;;  %1019 = vmatpush.msra.mxu3 %v1471_v2  ;;  %v1061_v55 = vpop.eup %1060  ;;  %vm222_vm9 = vcmp.ge.f32.partialorder %v1385_v32, %v1512_v0 }
  0x5f   :  { %870 = vmatpush.msrb.mxu2 %v1677_v28  ;;  %821 = vmatpush.msra.mxu0 %v1473_v7  ;;  %v1063_v2 = vpop.eup %1062  ;;  %v94_v33 = vmul.f32 2.1165347, %v1061_v55  ;;  %v317_v55 = vmul.f32 %v1411_v60, %v1276_v63  ;;  %v409_v63 = vsub.f32 %v290_v17, %v353_v38  ;;  %v298_v38 = vmul.f32 %v1200_v16, %v1527_v13 }
  0x60   :  { %1011 = vmatpush.msrb.mxu1 %v1682_v49  ;;  %1020 = vmatpush.msra.mxu3 %v1510_v43  ;;  %v1065_v24 = vpop.eup %1064  ;;  %v143_v7 = vmul.f32 2.1165347, %v1063_v2  ;;  %v1719_v49 = vmul.f32 %v1337_v47, %v1527_v13  ;;  %v1723_v43 = vmul.f32 %v2005_v15, %v1536_v26  ;;  %v380_v2 = vmul.f32 %v1414_v61, %v1283_v4 }
  0x61   :  { %958 = vmatmul.msk.f32.gmra.mxu0 %vm221_vm15, %v403_v46  ;;  %v379_v46 = vmul.f32 %v1414_v61, %v1263_v56  ;;  %v93_v56 = vmul.f32 2.1165347, %v1059_v18  ;;  %v142_v5 = vmul.f32 2.1165347, %v1065_v24  ;;  %v410_v4 = vsub.f32 %v291_v44, %v354_v27 }
  0x62   :  { %950 = vmatmul.msk.f32.gmra.mxu3 %vm220_vm14, %v402_v45  ;;  %v316_v45 = vmul.f32 %v1411_v60, %v1256_v52  ;;  %822 = vmatpush.msra.mxu0 %v1530_v19  ;;  %v431_v52 = vsub.f32 %v1719_v49, %v1723_v43  ;;  %v1745_v19 = vsel %vm59_vm0, %v94_v33, 0.0  ;;  %v361_v44 = vmul.f32 %v1210_v22, %v1536_v26 }
  0x63   :  { %1021 = vmatpush.msra.mxu3 %v1541_v51  ;;  %938 = vmatmul.msk.f32.gmra.mxu1 %vm246_vm13, %v428_v30  ;;  %v1749_v51 = vsel %vm59_vm0, %v143_v7, 0.0  ;;  %v1758_v18 = vmul.f32 %v2006_v9, %v1745_v19  ;;  %v297_v30 = vmul.f32 %v1200_v16, %v1489_v57  ;;  %v1780_v17 = vsel %vm58_vm2, %v93_v56, 0.0  ;;  %v2015_v56 = vld [vmem:[#allocation13_spill] sm:$0xff] }
  0x64   :  { %823 = vmatpush.msra.mxu0 %v1550_v58  ;;  %v1762_v24 = vmul.f32 %v2008_v29, %v1749_v51  ;;  %v435_v58 = vsub.f32 %v316_v45, %v379_v46  ;;  %v1805_v27 = vmul.f32 %v1393_v39, %v1745_v19  ;;  %v1809_v41 = vmul.f32 %v1404_v53, %v1749_v51 }
  0x65   :  { %1022 = vmatpush.msra.mxu3 %v1560_v8  ;;  %946 = vmatmul.msk.f32.gmra.mxu2 %vm247_vm1, %v429_v54  ;;  %v360_v54 = vmul.f32 %v1210_v22, %v1493_v59  ;;  %v417_v37 = vsub.f32 %v298_v38, %v361_v44  ;;  %vm209_vm10 = vcmp.ge.f32.partialorder %v2015_v56, %v1569_v36 }
  0x66   :  { %824 = vmatpush.msra.mxu0 %v1583_v42  ;;  %v405_v8 = vsub.f32 %v1758_v18, %v1762_v24  ;;  %v1784_v42 = vsel %vm58_vm2, %v142_v5, 0.0  ;;  %v2013_v5 = vld [vmem:[#allocation17_spill] sm:$0xff]  ;;  %vm229_vm13 = vcmp.ge.f32.partialorder %v1439_v50, %v1512_v0  ;;  %vm248_vm15 = vcmp.ge.f32.partialorder %v2010_v20, %v1279_v3 }
  0x67   :  { %1023 = vmatpush.msra.mxu3 %v1585_v10  ;;  %v436_v10 = vsub.f32 %v317_v55, %v380_v2  ;;  %v367_v7 = vmul.f32 %v2013_v5, %v1493_v59  ;;  %v368_v46 = vmul.f32 %v2013_v5, %v1536_v26  ;;  %v2014_v55 = vld [vmem:[#allocation22_spill] sm:$0xff]  ;;  %v1842_v2 = vmul.f32 %v2005_v15, %v1784_v42 }
  0x68   :  { %825 = vmatpush.msra.mxu0 %v1603_v62  ;;  %v285_v62 = vmul.f32 %v2006_v9, %v1780_v17  ;;  %v335_v9 = vmul.f32 %v1207_v21, %v1749_v51  ;;  %vm249_vm0 = vcmp.ge.f32.partialorder %v2010_v20, %v1380_v31  ;;  %vm236_vm1 = vcmp.ge.f32.partialorder %v1194_v12, %v1512_v0 }
  0x69   :  { %1024 = vmatpush.msra.mxu3 %v1608_v25  ;;  %959 = vmatmul.msk.f32.gmra.mxu0 %vm228_vm4, %v410_v4  ;;  %v348_v25 = vmul.f32 %v2008_v29, %v1784_v42  ;;  %v412_v29 = vsub.f32 %v1805_v27, %v1809_v41  ;;  %v377_v4 = vmul.f32 %v2005_v15, %v1749_v51 }
  0x6a   :  { %951 = vmatmul.msk.f32.gmra.mxu3 %vm227_vm3, %v409_v63  ;;  %826 = vmatpush.msra.mxu0 %v1617_v11  ;;  %v416_v11 = vsub.f32 %v297_v30, %v360_v54  ;;  %v314_v63 = vmul.f32 %v1337_v47, %v1745_v19  ;;  %v355_v30 = vmul.f32 %v1404_v53, %v1784_v42 }
  0x6b   :  { %1025 = vmatpush.msra.mxu3 %v1631_v23  ;;  %939 = vmatmul.msk.f32.gmra.mxu1 %vm253_vm5, %v435_v58  ;;  %v272_v23 = vmul.f32 %v1197_v14, %v1745_v19  ;;  %v292_v58 = vmul.f32 %v1393_v39, %v1780_v17  ;;  %vm223_vm2 = vcmp.ge.f32.partialorder %v1385_v32, %v1569_v36 }
  0x6c   :  { %827 = vmatpush.msra.mxu0 %v1653_v34  ;;  %v404_v34 = vsub.f32 %v285_v62, %v348_v25  ;;  %v2016_v62 = vld [vmem:[#allocation14_spill] sm:$0xff]  ;;  %v2017_v25 = vld [vmem:[#allocation15_spill] sm:$0xff]  ;;  %v369_v49 = vmul.f32 %v2013_v5, %v1784_v42  ;;  %vm255_vm3 = vcmp.ge.f32.partialorder %v1458_v6, %v1279_v3  ;;  %vm256_vm4 = vcmp.ge.f32.partialorder %v1458_v6, %v1380_v31 }
  0x6d   :  { %1026 = vmatpush.msra.mxu3 %v1655_v1  ;;  %947 = vmatmul.msk.f32.gmra.mxu2 %vm254_vm6, %v436_v10  ;;  %v2012_v1 = vld [vmem:[#allocation16_spill] sm:$0xff]  ;;  %v433_v10 = vsub.f32 %v314_v63, %v377_v4  ;;  %v342_v15 = vmul.f32 %v2017_v25, %v1749_v51  ;;  %v411_v39 = vsub.f32 %v292_v58, %v355_v30 }
  0x6e   :  { %828 = vmatpush.msra.mxu0 %v1669_v48  ;;  %v304_v33 = vmul.f32 %v2012_v1, %v1489_v57  ;;  %v305_v45 = vmul.f32 %v2012_v1, %v1527_v13  ;;  %v391_v48 = vsub.f32 %v272_v23, %v335_v9  ;;  %v299_v23 = vmul.f32 %v1200_v16, %v1780_v17 }
  0x6f   :  { %1027 = vmatpush.msra.mxu3 %v1677_v28  ;;  %v1838_v28 = vmul.f32 %v1337_v47, %v1780_v17  ;;  %v279_v47 = vmul.f32 %v2016_v62, %v1745_v19  ;;  %v362_v9 = vmul.f32 %v1210_v22, %v1784_v42  ;;  %vm230_vm6 = vcmp.ge.f32.partialorder %v1439_v50, %v1569_v36 }
  0x70   :  { %829 = vmatpush.msra.mxu0 %v2014_v55  ;;  %v423_v38 = vsub.f32 %v304_v33, %v367_v7  ;;  %v424_v44 = vsub.f32 %v305_v45, %v368_v46  ;;  %v318_v33 = vmul.f32 %v1411_v60, %v1489_v57  ;;  %v2020_v7 = vsub.f32 %v1690_v40, %v1694_v35 }
  0x71   :  { %960 = vmatmul.msk.f32.gmra.mxu0 %vm235_vm8, %v417_v37  ;;  %v432_v54 = vsub.f32 %v1838_v28, %v1842_v2  ;;  %v398_v53 = vsub.f32 %v279_v47, %v342_v15  ;;  %v2019_v37 = vld [vmem:[#allocation18_spill] sm:$0xff]  ;;  %v381_v45 = vmul.f32 %v1414_v61, %v1493_v59  ;;  %v319_v46 = vmul.f32 %v1411_v60, %v1527_v13 }
  0x72   :  { %952 = vmatmul.msk.f32.gmra.mxu3 %vm234_vm7, %v416_v11  ;;  %v2018_v11 = vld [vmem:[#allocation19_spill] sm:$0xff]  ;;  %vm216_vm14 = vcmp.ge.f32.partialorder %v2019_v37, %v1569_v36  ;;  %v382_v55 = vmul.f32 %v1414_v61, %v1536_v26  ;;  %v306_v57 = vmul.f32 %v2012_v1, %v1780_v17  ;;  %v271_v13 = vmul.f32 %v1197_v14, %v1780_v17 }
  0x73   :  { %966 = vmatmul.msk.f32.vlgmr.msrb.gmra.mxu1 %vm222_vm9, %v404_v34  ;;  %vm241_vm11 = vcmp.ge.f32.partialorder %v2018_v11, %v1279_v3  ;;  %vm242_vm12 = vcmp.ge.f32.partialorder %v2018_v11, %v1380_v31  ;;  %v418_v34 = vsub.f32 %v299_v23, %v362_v9  ;;  %v437_v59 = vsub.f32 %v318_v33, %v381_v45 }
  0x74   :  { %v438_v40 = vsub.f32 %v319_v46, %v382_v55  ;;  %v425_v32 = vsub.f32 %v306_v57, %v369_v49  ;;  %vm243_vm5 = vcmp.ge.f32.partialorder %v2018_v11, %v1512_v0  ;;  %v334_v26 = vmul.f32 %v1207_v21, %v1784_v42 }
  0x75   :  { %972 = vmatmul.msk.f32.vlgmr.msrb.gmra.mxu2 %vm209_vm10, %v391_v48  ;;  %v300_v3 = vmul.f32 %v1200_v16, %v1745_v19  ;;  %v363_v31 = vmul.f32 %v1210_v22, %v1749_v51  ;;  %vm208_vm7 = vcmp.ge.f32.partialorder %v2015_v56, %v1512_v0  ;;  %vm251_vm8 = vcmp.ge.f32.partialorder %v2010_v20, %v1569_v36 }
  0x76   :  { %v390_v35 = vsub.f32 %v271_v13, %v334_v26  ;;  %vm250_vm9 = vcmp.ge.f32.partialorder %v2010_v20, %v1512_v0  ;;  %v278_v16 = vmul.f32 %v2016_v62, %v1780_v17  ;;  %v341_v21 = vmul.f32 %v2017_v25, %v1784_v42 }
  0x77   :  { %v419_v14 = vsub.f32 %v300_v3, %v363_v31  ;;  %v321_v22 = vmul.f32 %v1411_v60, %v1745_v19  ;;  %v384_v50 = vmul.f32 %v1414_v61, %v1749_v51  ;;  %vm237_vm10 = vcmp.ge.f32.partialorder %v1194_v12, %v1569_v36 }
  0x78   :  { %v320_v20 = vmul.f32 %v1411_v60, %v1780_v17  ;;  %v383_v43 = vmul.f32 %v1414_v61, %v1784_v42  ;;  %v307_v18 = vmul.f32 %v2012_v1, %v1745_v19  ;;  %v370_v24 = vmul.f32 %v2013_v5, %v1749_v51 }
  0x79   :  { %961 = vmatmul.msk.f32.gmra.mxu0 %vm242_vm12, %v424_v44  ;;  %vm258_vm12 = vcmp.ge.f32.partialorder %v1458_v6, %v1569_v36 }
  0x7a   :  { %953 = vmatmul.msk.f32.gmra.mxu3 %vm241_vm11, %v423_v38  ;;  %vm215_vm11 = vcmp.ge.f32.partialorder %v2019_v37, %v1512_v0  ;;  %v439_v12 = vsub.f32 %v320_v20, %v383_v43  ;;  %v426_v60 = vsub.f32 %v307_v18, %v370_v24 }
  0x7b   :  { %967 = vmatmul.msk.f32.gmra.mxu1 %vm229_vm13, %v411_v39  ;;  %vm257_vm13 = vcmp.ge.f32.partialorder %v1458_v6, %v1512_v0 }
  0x7d   :  { %973 = vmatmul.msk.f32.gmra.mxu2 %vm216_vm14, %v398_v53  ;;  %vm244_vm14 = vcmp.ge.f32.partialorder %v2018_v11, %v1569_v36 }
  0x81   :  { %962 = vmatmul.msk.f32.gmra.mxu0 %vm249_vm0, %v431_v52  ;;  %v397_v52 = vsub.f32 %v278_v16, %v341_v21 }
  0x82   :  { %954 = vmatmul.msk.f32.gmra.mxu3 %vm248_vm15, %v2020_v7 }
  0x83   :  { %968 = vmatmul.msk.f32.gmra.mxu1 %vm236_vm1, %v418_v34 }
  0x85   :  { %974 = vmatmul.msk.f32.gmra.mxu2 %vm223_vm2, %v405_v8  ;;  %v440_v8 = vsub.f32 %v321_v22, %v384_v50 }
  0x89   :  { %963 = vmatmul.msk.f32.gmra.mxu0 %vm256_vm4, %v438_v40 }
  0x8a   :  { %955 = vmatmul.msk.f32.gmra.mxu3 %vm255_vm3, %v437_v59 }
  0x8b   :  { %969 = vmatmul.msk.f32.gmra.mxu1 %vm243_vm5, %v425_v32 }
  0x8d   :  { %975 = vmatmul.msk.f32.gmra.mxu2 %vm230_vm6, %v412_v29 }
  0x91   :  { %964 = vmatmul.msk.f32.vlgmr.msra.gmra.mxu0 %vm208_vm7, %v390_v35 }
  0x92   :  { %978 = vmatmul.msk.f32.vlgmr.msra.gmra.mxu3 %vm251_vm8, %v433_v10 }
  0x93   :  { %970 = vmatmul.msk.f32.gmra.mxu1 %vm250_vm9, %v432_v54 }
  0x95   :  { %976 = vmatmul.msk.f32.gmra.mxu2 %vm237_vm10, %v419_v14 }
  0x99   :  { %965 = vmatmul.msk.f32.gmra.mxu0 %vm215_vm11, %v397_v52 }
  0x9a   :  { %979 = vmatmul.msk.f32.gmra.mxu3 %vm258_vm12, %v440_v8 }
  0x9b   :  { %971 = vmatmul.msk.f32.gmra.mxu1 %vm257_vm13, %v439_v12 }
  0x9d   :  { %977 = vmatmul.msk.f32.gmra.mxu2 %vm244_vm14, %v426_v60 }
  0xad   :  { %v626_v61 = vpop.f32.mrf.mxu0 }
  0xb0   :  { %v667_v19 = vpop.f32.mrf.mxu1 }
  0xb1   :  { %v668_v51 = vadd.f32 %v667_v19, %v626_v61 }
  0xb5   :  { %v638_v17 = vpop.f32.mrf.mxu3 }
  0xb6   :  { %v629_v42 = vpop.f32.mrf.mxu0 }
  0xb7   :  { %v708_v27 = vpop.f32.mrf.mxu2 }
  0xb8   :  { %v670_v41 = vpop.f32.mrf.mxu1  ;;  %v709_v29 = vadd.f32 %v708_v27, %v668_v51 }
  0xb9   :  { %v671_v1 = vadd.f32 %v670_v41, %v629_v42 }
  0xbd   :  { %v1952_v5 = vpop.f32.mrf.mxu3 }
  0xbe   :  { %v632_v6 = vpop.f32.mrf.mxu0 }
  0xbf   :  { %v711_v0 = vpop.f32.mrf.mxu2 }
  0xc0   :  { %v673_v48 = vpop.f32.mrf.mxu1  ;;  %v1954_v28 = vadd.f32 %v711_v0, %v671_v1 }
  0xc1   :  { %v674_v2 = vadd.f32 %v673_v48, %v632_v6 }
  0xc5   :  { %v644_v36 = vpop.f32.mrf.mxu3 }
  0xc6   :  { %v635_v56 = vpop.f32.mrf.mxu0 }
  0xc7   :  { %v714_v63 = vpop.f32.mrf.mxu2 }
  0xc8   :  { %v676_v4 = vpop.f32.mrf.mxu1  ;;  %v715_v58 = vadd.f32 %v714_v63, %v674_v2 }
  0xc9   :  { %v677_v30 = vadd.f32 %v676_v4, %v635_v56 }
  0xcd   :  { %v647_v54 = vpop.f32.mrf.mxu3 }
  0xce   :  { %v790_v10 = vpop.f32.mrf.mxu0 }
  0xcf   :  { %v717_v38 = vpop.f32.mrf.mxu2 }
  0xd0   :  { %v679_v44 = vpop.f32.mrf.mxu1  ;;  %v718_v62 = vadd.f32 %v717_v38, %v677_v30 }
  0xd1   :  { %v680_v47 = vadd.f32 %v679_v44, %v638_v17 }
  0xd5   :  { %v749_v25 = vpop.f32.mrf.mxu3 }
  0xd6   :  { %v750_v15 = vadd.f32 %v749_v25, %v709_v29  ;;  %v1956_v11 = vpop.f32.mrf.mxu0 }
  0xd8   :  { %v791_v39 = vadd.f32 %v790_v10, %v750_v15  ;;  %v720_v53 = vpop.f32.mrf.mxu2  ;;  %v682_v37 = vpop.f32.mrf.mxu1 }
  0xd9   :  { %v721_v23 = vadd.f32 %v720_v53, %v680_v47  ;;  %v683_v6 = vadd.f32 %v682_v37, %v1952_v5 }
  0xdd   :  { %v752_v9 = vpop.f32.mrf.mxu3 }
  0xde   :  { %v796_v34 = vpop.f32.mrf.mxu0  ;;  %v753_v30 = vadd.f32 %v752_v9, %v1954_v28 }
  0xe0   :  { %v723_v33 = vpop.f32.mrf.mxu2  ;;  %v685_v7 = vpop.f32.mrf.mxu1 }
  0xe1   :  { %v686_v52 = vadd.f32 %v685_v7, %v644_v36 }
  0xe5   :  { %v755_v45 = vpop.f32.mrf.mxu3 }
  0xe6   :  { %v799_v46 = vpop.f32.mrf.mxu0  ;;  %v756_v8 = vadd.f32 %v755_v45, %v715_v58  ;;  %v724_v58 = vadd.f32 %v723_v33, %v683_v6 }
  0xe8   :  { %v726_v55 = vpop.f32.mrf.mxu2  ;;  %v688_v57 = vpop.f32.mrf.mxu1  ;;  %v797_v42 = vadd.f32 %v796_v34, %v756_v8  ;;  %v794_v34 = vadd.f32 %v1956_v11, %v753_v30 }
  0xe9   :  { %v727_v18 = vadd.f32 %v726_v55, %v686_v52  ;;  %v689_v17 = vadd.f32 %v688_v57, %v647_v54 }
  0xed   :  { %v758_v49 = vpop.f32.mrf.mxu3 }
  0xee   :  { %v802_v59 = vpop.f32.mrf.mxu0  ;;  %v759_v0 = vadd.f32 %v758_v49, %v718_v62 }
  0xf0   :  { %v729_v40 = vpop.f32.mrf.mxu2  ;;  %v837_v32 = vpop.f32.mrf.mxu1  ;;  %v800_v54 = vadd.f32 %v799_v46, %v759_v0 }
  0xf1   :  { %v730_v41 = vadd.f32 %v729_v40, %v689_v17  ;;  %v838_v29 = vadd.f32 %v837_v32, %v797_v42 }
  0xf5   :  { %v761_v13 = vpop.f32.mrf.mxu3 }
  0xf6   :  { %v805_v26 = vpop.f32.mrf.mxu0  ;;  %v762_v61 = vadd.f32 %v761_v13, %v721_v23 }
  0xf8   :  { %v872_v3 = vpop.f32.mrf.mxu2  ;;  %v840_v31 = vpop.f32.mrf.mxu1  ;;  %v803_v48 = vadd.f32 %v802_v59, %v762_v61 }
  0xf9   :  { %v841_v62 = vadd.f32 %v840_v31, %v800_v54 }
  0xfd   :  { %v764_v35 = vpop.f32.mrf.mxu3 }
  0xfe   :  { %v808_v14 = vpop.f32.mrf.mxu0  ;;  %v765_v25 = vadd.f32 %v764_v35, %v724_v58 }
 0x100   :  { %v875_v16 = vpop.f32.mrf.mxu2  ;;  %v843_v21 = vpop.f32.mrf.mxu1  ;;  %v806_v45 = vadd.f32 %v805_v26, %v765_v25 }
 0x101   :  { %v844_v10 = vadd.f32 %v843_v21, %v803_v48 }
 0x105   :  { %v767_v22 = vpop.f32.mrf.mxu3 }
 0x106   :  { %v811_v50 = vpop.f32.mrf.mxu0  ;;  %v768_v12 = vadd.f32 %v767_v22, %v727_v18 }
 0x108   :  { %v878_v20 = vpop.f32.mrf.mxu2  ;;  %v846_v43 = vpop.f32.mrf.mxu1  ;;  %v809_v27 = vadd.f32 %v808_v14, %v768_v12 }
 0x109   :  { %v879_v36 = vadd.f32 %v878_v20, %v838_v29  ;;  %v847_v9 = vadd.f32 %v846_v43, %v806_v45 }
 0x10d   :  { %v770_v24 = vpop.f32.mrf.mxu3 }
 0x10e   :  { %v831_v60 = vpop.f32.mrf.mxu0  ;;  %v771_v56 = vadd.f32 %v770_v24, %v730_v41 }
 0x10f   :  { %v832_v63 = vadd.f32 %v831_v60, %v791_v39 }
 0x110   :  { %v881_v19 = vpop.f32.mrf.mxu2  ;;  %v849_v51 = vpop.f32.mrf.mxu1  ;;  %v812_v23 = vadd.f32 %v811_v50, %v771_v56 }
 0x111   :  { %v850_v1 = vadd.f32 %v849_v51, %v809_v27  ;;  %v873_v15 = vadd.f32 %v872_v3, %v832_v63  ;;  %v882_v33 = vadd.f32 %v881_v19, %v841_v62 }
 0x115   :  { %v890_v2 = vpop.f32.mrf.mxu3 }
 0x116   :  { %v891_v4 = vadd.f32 %v890_v2, %v850_v1  ;;  %v834_v5 = vpop.f32.mrf.mxu0 }
 0x117   :  { %v835_v55 = vadd.f32 %v834_v5, %v794_v34 }
 0x118   :  { %v899_v38 = vmax.f32 %v879_v36, %v891_v4  ;;  %v884_v44 = vpop.f32.mrf.mxu2  ;;  %v852_v47 = vpop.f32.mrf.mxu1 }
 0x119   :  { %v885_v53 = vadd.f32 %v884_v44, %v844_v10  ;;  %v853_v7 = vadd.f32 %v852_v47, %v812_v23  ;;  %v876_v49 = vadd.f32 %v875_v16, %v835_v55 }
 0x11b   :  { %v897_v37 = vmax.f32 %v873_v15, %v885_v53 }
 0x11d   :  { %v893_v39 = vpop.f32.mrf.mxu3 }
 0x11e   :  { %v894_v28 = vadd.f32 %v893_v39, %v853_v7 }
 0x120   :  { %v900_v57 = vmax.f32 %v882_v33, %v894_v28  ;;  %v887_v46 = vpop.f32.mrf.mxu2 }
 0x121   :  { %v888_v59 = vadd.f32 %v887_v46, %v847_v9 }
 0x122   :  { %v902_v40 = vmax.f32 %v899_v38, %v900_v57 }
 0x123   :  { %v898_v32 = vmax.f32 %v876_v49, %v888_v59 }
 0x125   :  { %v901_v13 = vmax.f32 %v897_v37, %v898_v32 }
 0x127   :  { %v903_v11 = vmax.f32 %v901_v13, %v902_v40 }
 0x129   :  { %905 = vst [vmem:[#allocation9] sm:$0xff] %v903_v11 }
 0x12a   :  { %916 = dma.vmem_to_hbm [thread:$0]  %s912_s1, 128, %s914_s23, [#allocation6]  }
 0x12b   :  { %1142 = dma.done.wait [#allocation6], 128  }
 0x12c   :  { %1143 = vsyncadd [#allocation6], 4294967168 }
 0x12d   :  { %921 = vsyncpa [#allocation5], 1 }
 0x12e   :  { %922 = vsyncpa [#allocation8], 1 }
 0x12f   :  { %923 = vsyncpa [#allocation6], 1 }

</bundles_post_ra>
